<compile_context>
chip_gen: v7x
topology: tpu7x:2x2x1
jax: 0.10.0
libtpu: 0.0.40
codegen_flags: <defaults>
</compile_context>

<pallas_src>
import functools
import math

import jax
import jax.numpy as jnp
from jax.experimental import pallas as pl
from jax.experimental.pallas import tpu as pltpu


_SOFTMAX_PAD = -1e30                 # plain Python float (never captured as a traced const)
_VMEM_BUDGET_BYTES = 24 * 1024 * 1024   # keep headroom under v7x 32 MiB scoped / 64 MiB phys
_MAX_WEIGHT_BYTES = 16 * 1024 * 1024    # per-layer fully-resident allowance


def _round_up(n, m):
    return ((n + m - 1) // m) * m


def _pad_feature(d):
    # v6e/v7x MXUs are 256x256 -> pad wide layers to 256; 128 otherwise (v5e optimal).
    g = 256 if d >= 256 else 128
    return _round_up(d, g)


# ----------------------------------------------------------------------------- kernel
def _mlp_fused_kernel(*refs, n_layers, apply_softmax, precision):
    """refs = (x_ref, w0_ref, b0_ref, ..., w{L-1}_ref, b{L-1}_ref, o_ref).

    x_ref:  (tm, K0_pad)      padded f32 input batch tile
    wi_ref: (Ki_pad, Ni_pad)  pre-transposed, zero-padded weight (bf16 or f32)
    bi_ref: (1, Ni_pad)       f32 bias; last layer's padding cols hold -1e30
                              (softmax mask baked in at pack time)
    o_ref:  (tm, N_last_pad)  padded f32 output tile (lane-dense store)
    """
    x_ref = refs[0]
    o_ref = refs[-1]
    param_refs = refs[1:-1]

    h = x_ref[...]  # activations live in VMEM/vregs for the whole MLP
    for layer in range(n_layers):
        w = param_refs[2 * layer][...]          # already in MXU operand dtype
        b = param_refs[2 * layer + 1][...]
        acc = jnp.dot(
            h.astype(w.dtype), w,
            preferred_element_type=jnp.float32,
            precision=precision,
        )
        acc = acc + b                            # broadcast bias over batch
        if layer < n_layers - 1:
            acc = jnp.maximum(acc, 0.0)          # ReLU on hidden layers only
        h = acc

    if apply_softmax:
        # Padding columns already carry -1e30 from the packed last-layer bias,
        # so exp() zeroes them out; padded (zero) batch rows stay finite and
        # are sliced away outside the kernel.
        m = jnp.max(h, axis=-1, keepdims=True)
        e = jnp.exp(h - m)
        s = jnp.sum(e, axis=-1, keepdims=True)
        h = e / s                                # exact divide: parity with PyTorch

    o_ref[...] = h.astype(o_ref.dtype)


# ----------------------------------------------------------------------------- params
def init_mlp_params(key, dimensions):
    """PyTorch-style Linear init: U(-1/sqrt(fan_in), ...). w is (out, in) like nn.Linear."""
    params = []
    for fan_in, fan_out in zip(dimensions, dimensions[1:]):
        key, kw, kb = jax.random.split(key, 3)
        bound = 1.0 / math.sqrt(fan_in)
        w = jax.random.uniform(kw, (fan_out, fan_in), jnp.float32, -bound, bound)
        b = jax.random.uniform(kb, (fan_out,), jnp.float32, -bound, bound)
        params.append((w, b))
    return params


def pack_params(params, param_dtype=jnp.bfloat16):
    """One-time packing: transpose to (in, out), zero-pad feature dims, cast weights.

    * weights stored in `param_dtype` (bf16 by default -> half the DMA bytes,
      native MXU operands, no per-step cast in the kernel)
    * biases stay f32 (added to the f32 accumulator)
    * the LAST layer's bias padding columns are filled with -1e30 so the
      softmax padding mask costs nothing inside the kernel
    """
    packed = []
    dims = [params[0][0].shape[1]] + [w.shape[0] for w, _ in params]
    n_layers = len(params)
    for idx, (w, b) in enumerate(params):
        fan_out, fan_in = w.shape
        k_pad = _pad_feature(fan_in)
        n_pad = _pad_feature(fan_out)
        w_t = (jnp.zeros((k_pad, n_pad), jnp.float32)
               .at[:fan_in, :fan_out].set(w.T)
               .astype(param_dtype))
        pad_fill = _SOFTMAX_PAD if idx == n_layers - 1 else 0.0
        b_p = jnp.full((1, n_pad), pad_fill, jnp.float32).at[0, :fan_out].set(b)
        packed.append((w_t, b_p))
    return packed, dims


# ----------------------------------------------------------------------------- forward
def _vmem_bytes(packed_params, tm, k0_pad, n_out_pad, weight_bufs):
    w_bytes = sum(w.size * w.dtype.itemsize + b.size * b.dtype.itemsize
                  for w, b in packed_params)
    max_feat = max([k0_pad, n_out_pad] + [int(w.shape[1]) for w, _ in packed_params])
    io_bytes = 2 * tm * (k0_pad + n_out_pad) * 4      # double-buffered in/out tiles
    act_bytes = 3 * tm * max_feat * 4                 # live act + f32 acc + cast copy
    return weight_bufs * w_bytes + io_bytes + act_bytes


def mlp_forward(packed_params, dims, x_in, apply_softmax=False, *, batch_tile=512):
    """Mirrors MultilayerPerceptron.forward (activation = ReLU)."""
    x_in = jnp.asarray(x_in, jnp.float32)
    M, K = x_in.shape
    assert K == dims[0], f"expected input features {dims[0]}, got {K}"
    n_layers = len(packed_params)
    n_out = dims[-1]

    weight_dtype = packed_params[0][0].dtype
    # exact f32 path needs HIGHEST to match the f32 PyTorch module bit-for-bit-ish
    precision = jax.lax.Precision.HIGHEST if weight_dtype == jnp.float32 else None

    k0_pad = _pad_feature(K)
    n_out_pad = _pad_feature(n_out)

    # TODO(synk): layers whose padded weight exceeds the per-layer allowance need a
    # K-tiled fallback (grid axis marked "arbitrary" + f32 VMEM accumulator) instead
    # of holding the whole weight resident; not needed at these sizes.
    for w_t, _ in packed_params:
        if w_t.size * w_t.dtype.itemsize > _MAX_WEIGHT_BYTES:
            raise NotImplementedError("layer weight too large for fully-resident fused kernel")

    # --- batch tiling: sublane granularity (bf16 packs 16 rows/vreg), megacore
    # split, and an explicit VMEM budget that caps tm.
    sub = 16 if weight_dtype == jnp.bfloat16 else 8
    batch_tile = max(sub, _round_up(batch_tile, sub))
    m_pad0 = _round_up(max(M, sub), sub)
    tm = min(batch_tile, m_pad0)
    if tm >= m_pad0 and m_pad0 >= 2 * sub:
        # single-step grid would leave one v7x TensorCore idle -> split into >=2 tiles
        tm = _round_up(pl.cdiv(m_pad0, 2), sub)
    while _vmem_bytes(packed_params, tm, k0_pad, n_out_pad, weight_bufs=2) > _VMEM_BUDGET_BYTES \
            and tm > sub:
        tm = max(sub, _round_up(tm // 2, sub))
    m_pad = _round_up(m_pad0, tm)

    vmem_est = _vmem_bytes(packed_params, tm, k0_pad, n_out_pad, weight_bufs=2)
    vmem_limit = int(min(64 << 20, max(24 << 20, round(1.25 * vmem_est))))

    # --- input padding: skip the extra HBM round-trip when already aligned.
    if M == m_pad and K == k0_pad:
        x_pad = x_in
    else:
        x_pad = jnp.zeros((m_pad, k0_pad), jnp.float32).at[:M, :K].set(x_in)

    flat_params = []
    for w_t, b_p in packed_params:
        flat_params.extend([w_t, b_p])

    kernel = functools.partial(
        _mlp_fused_kernel,
        n_layers=n_layers,
        apply_softmax=apply_softmax,
        precision=precision,
    )

    param_bytes = sum(p.size * p.dtype.itemsize for p in flat_params)
    cost = pl.CostEstimate(
        flops=2 * M * sum(int(w.shape[0]) * int(w.shape[1]) for w, _ in packed_params),
        transcendentals=(M * n_out) if apply_softmax else 0,
        bytes_accessed=int(x_in.size * 4 + param_bytes + M * n_out * 4),
    )

    def _build_call(weight_pipeline_mode):
        in_specs = [pl.BlockSpec((tm, k0_pad), lambda i: (i, 0))]
        for w_t, b_p in packed_params:
            in_specs.append(pl.BlockSpec(w_t.shape, lambda i: (0, 0),
                                         pipeline_mode=weight_pipeline_mode))
            in_specs.append(pl.BlockSpec(b_p.shape, lambda i: (0, 0),
                                         pipeline_mode=weight_pipeline_mode))
        return pl.pallas_call(
            kernel,
            out_shape=jax.ShapeDtypeStruct((m_pad, n_out_pad), jnp.float32),
            grid=(m_pad // tm,),
            in_specs=in_specs,
            out_specs=pl.BlockSpec((tm, n_out_pad), lambda i: (i, 0)),
            compiler_params=pltpu.CompilerParams(
                dimension_semantics=("parallel",),   # batch tiles shard across v7x TCs
                vmem_limit_bytes=vmem_limit,
            ),
            cost_estimate=cost,
        )

    try:
        # Weights/biases are grid-invariant (index_map == (0,0)): their refetch is
        # elided, so single-buffer them to halve their VMEM footprint.
        out_pad = _build_call(pl.Buffered(1))(x_pad, *flat_params)
    except Exception:
        # Fallback if this JAX build rejects single-buffered top-level BlockSpecs.
        out_pad = _build_call(None)(x_pad, *flat_params)

    return out_pad[:M, :n_out]


# ----------------------------------------------------------------------------- reference
def mlp_reference(params, x_in, apply_softmax=False):
    result = x_in
    for idx, (w, b) in enumerate(params):
        result = jnp.dot(result, w.T, precision=jax.lax.Precision.HIGHEST) + b
        if idx < len(params) - 1:
            result = jnp.maximum(result, 0.0)
    if apply_softmax:
        result = jax.nn.softmax(result, axis=1)
    return result


if __name__ == "__main__":
    key = jax.random.PRNGKey(0)
    dimensions = [16, 32, 32, 8]   # MLP: 16 -> 32 -> 32 -> 8
    kp, kx, kx2 = jax.random.split(key, 3)

    params = init_mlp_params(kp, dimensions)
    packed_bf16, dims = pack_params(params)                        # fast bf16 MXU path
    packed_f32, _ = pack_params(params, param_dtype=jnp.float32)   # exact f32 path

    # --- test 1: softmax head, default bf16 weights (single grid step) -------
    batch = 2
    x = jax.random.normal(kx, (batch, dimensions[0]), jnp.float32)
    out = jax.block_until_ready(mlp_forward(packed_bf16, dims, x, apply_softmax=True))
    ref = mlp_reference(params, x, apply_softmax=True)
    assert out.shape == (batch, dimensions[-1])
    # bf16 operands vs f32 reference -> relaxed tolerance
    assert jnp.allclose(out, ref, atol=3e-2, rtol=3e-2), "softmax output mismatch"

    # --- test 2: logits, exact f32 path, multi-step parallel batch grid ------
    batch2 = 20
    x2 = jax.random.normal(kx2, (batch2, dimensions[0]), jnp.float32)
    out2 = jax.block_until_ready(mlp_forward(packed_f32, dims, x2, apply_softmax=False))
    ref2 = mlp_reference(params, x2, apply_softmax=False)
    assert out2.shape == (batch2, dimensions[-1])
    assert jnp.allclose(out2, ref2, atol=1e-4, rtol=1e-4), "logits mismatch"

    print("KERNEL_OK")
</pallas_src>

<mosaic_0001>
module attributes {stable_mosaic.version = 11 : i64} {
  func.func @_mlp_fused_kernel(%arg0: i32, %arg1: memref<16x128xf32, #tpu.memory_space<vmem>>, %arg2: memref<128x128xbf16, #tpu.memory_space<vmem>>, %arg3: memref<1x128xf32, #tpu.memory_space<vmem>>, %arg4: memref<128x128xbf16, #tpu.memory_space<vmem>>, %arg5: memref<1x128xf32, #tpu.memory_space<vmem>>, %arg6: memref<128x128xbf16, #tpu.memory_space<vmem>>, %arg7: memref<1x128xf32, #tpu.memory_space<vmem>>, %arg8: memref<16x128xf32, #tpu.memory_space<vmem>>) attributes {dimension_semantics = [#tpu.dimension_semantics<parallel>], iteration_bounds = array<i64: 1>, scalar_prefetch = 0 : i64, scratch_operands = 0 : i64, tpu.core_type = #tpu.core_type<tc>, window_params = [{transform_indices = @transform_0, window_bounds = array<i64: 16, 128>}, {pipeline_mode = #tpu.pipeline_mode<synchronous>, transform_indices = @transform_1, window_bounds = array<i64: 128, 128>}, {pipeline_mode = #tpu.pipeline_mode<synchronous>, transform_indices = @transform_2, window_bounds = array<i64: 1, 128>}, {pipeline_mode = #tpu.pipeline_mode<synchronous>, transform_indices = @transform_3, window_bounds = array<i64: 128, 128>}, {pipeline_mode = #tpu.pipeline_mode<synchronous>, transform_indices = @transform_4, window_bounds = array<i64: 1, 128>}, {pipeline_mode = #tpu.pipeline_mode<synchronous>, transform_indices = @transform_5, window_bounds = array<i64: 128, 128>}, {pipeline_mode = #tpu.pipeline_mode<synchronous>, transform_indices = @transform_6, window_bounds = array<i64: 1, 128>}, {transform_indices = @transform_7, window_bounds = array<i64: 16, 128>}]} {
    %c0 = arith.constant 0 : index
    %c0_0 = arith.constant 0 : index
    %0 = vector.load %arg1[%c0, %c0_0] : memref<16x128xf32, #tpu.memory_space<vmem>>, vector<16x128xf32>
    %c0_1 = arith.constant 0 : index
    %c0_2 = arith.constant 0 : index
    %1 = vector.load %arg2[%c0_1, %c0_2] : memref<128x128xbf16, #tpu.memory_space<vmem>>, vector<128x128xbf16>
    %c0_3 = arith.constant 0 : index
    %c0_4 = arith.constant 0 : index
    %2 = vector.load %arg3[%c0_3, %c0_4] : memref<1x128xf32, #tpu.memory_space<vmem>>, vector<1x128xf32>
    %3 = arith.truncf %0 : vector<16x128xf32> to vector<16x128xbf16>
    %cst = arith.constant dense<0.000000e+00> : vector<16x128xf32>
    %4 = tpu.matmul %3, %1, %cst {dimension_numbers = #tpu.dot_dimension_numbers<[1], [0], [0], [1], [0, 0, 1, 1], [], []>} : vector<16x128xbf16>, vector<128x128xbf16>, vector<16x128xf32> -> vector<16x128xf32>
    %5 = vector.broadcast %2 : vector<1x128xf32> to vector<16x128xf32>
    %6 = arith.addf %4, %5 : vector<16x128xf32>
    %cst_5 = arith.constant 0.000000e+00 : f32
    %7 = vector.broadcast %cst_5 : f32 to vector<16x128xf32>
    %8 = arith.maximumf %6, %7 : vector<16x128xf32>
    %c0_6 = arith.constant 0 : index
    %c0_7 = arith.constant 0 : index
    %9 = vector.load %arg4[%c0_6, %c0_7] : memref<128x128xbf16, #tpu.memory_space<vmem>>, vector<128x128xbf16>
    %c0_8 = arith.constant 0 : index
    %c0_9 = arith.constant 0 : index
    %10 = vector.load %arg5[%c0_8, %c0_9] : memref<1x128xf32, #tpu.memory_space<vmem>>, vector<1x128xf32>
    %11 = arith.truncf %8 : vector<16x128xf32> to vector<16x128xbf16>
    %cst_10 = arith.constant dense<0.000000e+00> : vector<16x128xf32>
    %12 = tpu.matmul %11, %9, %cst_10 {dimension_numbers = #tpu.dot_dimension_numbers<[1], [0], [0], [1], [0, 0, 1, 1], [], []>} : vector<16x128xbf16>, vector<128x128xbf16>, vector<16x128xf32> -> vector<16x128xf32>
    %13 = vector.broadcast %10 : vector<1x128xf32> to vector<16x128xf32>
    %14 = arith.addf %12, %13 : vector<16x128xf32>
    %cst_11 = arith.constant 0.000000e+00 : f32
    %15 = vector.broadcast %cst_11 : f32 to vector<16x128xf32>
    %16 = arith.maximumf %14, %15 : vector<16x128xf32>
    %c0_12 = arith.constant 0 : index
    %c0_13 = arith.constant 0 : index
    %17 = vector.load %arg6[%c0_12, %c0_13] : memref<128x128xbf16, #tpu.memory_space<vmem>>, vector<128x128xbf16>
    %c0_14 = arith.constant 0 : index
    %c0_15 = arith.constant 0 : index
    %18 = vector.load %arg7[%c0_14, %c0_15] : memref<1x128xf32, #tpu.memory_space<vmem>>, vector<1x128xf32>
    %19 = arith.truncf %16 : vector<16x128xf32> to vector<16x128xbf16>
    %cst_16 = arith.constant dense<0.000000e+00> : vector<16x128xf32>
    %20 = tpu.matmul %19, %17, %cst_16 {dimension_numbers = #tpu.dot_dimension_numbers<[1], [0], [0], [1], [0, 0, 1, 1], [], []>} : vector<16x128xbf16>, vector<128x128xbf16>, vector<16x128xf32> -> vector<16x128xf32>
    %21 = vector.broadcast %18 : vector<1x128xf32> to vector<16x128xf32>
    %22 = arith.addf %20, %21 : vector<16x128xf32>
    %cst_17 = arith.constant dense<0xFF800000> : vector<16xf32>
    %23 = vector.multi_reduction <maximumf>, %22, %cst_17 [1] : vector<16x128xf32> to vector<16xf32>
    %24 = vector.shape_cast %23 : vector<16xf32> to vector<16x1xf32>
    %25 = vector.broadcast %24 : vector<16x1xf32> to vector<16x128xf32>
    %26 = arith.subf %22, %25 : vector<16x128xf32>
    %27 = math.exp %26 : vector<16x128xf32>
    %cst_18 = arith.constant dense<0.000000e+00> : vector<16xf32>
    %28 = vector.multi_reduction <add>, %27, %cst_18 [1] : vector<16x128xf32> to vector<16xf32>
    %29 = vector.shape_cast %28 : vector<16xf32> to vector<16x1xf32>
    %30 = vector.broadcast %29 : vector<16x1xf32> to vector<16x128xf32>
    %31 = arith.divf %27, %30 : vector<16x128xf32>
    %c0_19 = arith.constant 0 : index
    %c0_20 = arith.constant 0 : index
    %32 = vector.load %arg8[%c0_19, %c0_20] : memref<16x128xf32, #tpu.memory_space<vmem>>, vector<16x128xf32>
    tpu.vector_store %arg8[%c0_19, %c0_20], %31 {strides = array<i32>} : memref<16x128xf32, #tpu.memory_space<vmem>>, vector<16x128xf32>,
    return
  }
  func.func @transform_0(%arg0: i32) -> (i32, i32) {
    %c0_i32 = arith.constant 0 : i32
    %c0_i32_0 = arith.constant 0 : i32
    return %arg0, %c0_i32 : i32, i32
  }
  func.func @transform_1(%arg0: i32) -> (i32, i32) {
    %c0_i32 = arith.constant 0 : i32
    %c0_i32_0 = arith.constant 0 : i32
    %c0_i32_1 = arith.constant 0 : i32
    return %c0_i32, %c0_i32_0 : i32, i32
  }
  func.func @transform_2(%arg0: i32) -> (i32, i32) {
    %c0_i32 = arith.constant 0 : i32
    %c0_i32_0 = arith.constant 0 : i32
    %c0_i32_1 = arith.constant 0 : i32
    return %c0_i32, %c0_i32_0 : i32, i32
  }
  func.func @transform_3(%arg0: i32) -> (i32, i32) {
    %c0_i32 = arith.constant 0 : i32
    %c0_i32_0 = arith.constant 0 : i32
    %c0_i32_1 = arith.constant 0 : i32
    return %c0_i32, %c0_i32_0 : i32, i32
  }
  func.func @transform_4(%arg0: i32) -> (i32, i32) {
    %c0_i32 = arith.constant 0 : i32
    %c0_i32_0 = arith.constant 0 : i32
    %c0_i32_1 = arith.constant 0 : i32
    return %c0_i32, %c0_i32_0 : i32, i32
  }
  func.func @transform_5(%arg0: i32) -> (i32, i32) {
    %c0_i32 = arith.constant 0 : i32
    %c0_i32_0 = arith.constant 0 : i32
    %c0_i32_1 = arith.constant 0 : i32
    return %c0_i32, %c0_i32_0 : i32, i32
  }
  func.func @transform_6(%arg0: i32) -> (i32, i32) {
    %c0_i32 = arith.constant 0 : i32
    %c0_i32_0 = arith.constant 0 : i32
    %c0_i32_1 = arith.constant 0 : i32
    return %c0_i32, %c0_i32_0 : i32, i32
  }
  func.func @transform_7(%arg0: i32) -> (i32, i32) {
    %c0_i32 = arith.constant 0 : i32
    %c0_i32_0 = arith.constant 0 : i32
    return %arg0, %c0_i32 : i32, i32
  }
}

module attributes {stable_mosaic.version = 11 : i64} {
  func.func @_mlp_fused_kernel(%arg0: i32, %arg1: memref<16x128xf32, #tpu.memory_space<vmem>>, %arg2: memref<128x128xbf16, #tpu.memory_space<vmem>>, %arg3: memref<1x128xf32, #tpu.memory_space<vmem>>, %arg4: memref<128x128xbf16, #tpu.memory_space<vmem>>, %arg5: memref<1x128xf32, #tpu.memory_space<vmem>>, %arg6: memref<128x128xbf16, #tpu.memory_space<vmem>>, %arg7: memref<1x128xf32, #tpu.memory_space<vmem>>, %arg8: memref<16x128xf32, #tpu.memory_space<vmem>>) attributes {dimension_semantics = [#tpu.dimension_semantics<parallel>], iteration_bounds = array<i64: 1>, scalar_prefetch = 0 : i64, scratch_operands = 0 : i64, tpu.core_type = #tpu.core_type<tc>, window_params = [{transform_indices = @transform_0, window_bounds = array<i64: 16, 128>}, {pipeline_mode = #tpu.pipeline_mode<synchronous>, transform_indices = @transform_1, window_bounds = array<i64: 128, 128>}, {pipeline_mode = #tpu.pipeline_mode<synchronous>, transform_indices = @transform_2, window_bounds = array<i64: 1, 128>}, {pipeline_mode = #tpu.pipeline_mode<synchronous>, transform_indices = @transform_3, window_bounds = array<i64: 128, 128>}, {pipeline_mode = #tpu.pipeline_mode<synchronous>, transform_indices = @transform_4, window_bounds = array<i64: 1, 128>}, {pipeline_mode = #tpu.pipeline_mode<synchronous>, transform_indices = @transform_5, window_bounds = array<i64: 128, 128>}, {pipeline_mode = #tpu.pipeline_mode<synchronous>, transform_indices = @transform_6, window_bounds = array<i64: 1, 128>}, {transform_indices = @transform_7, window_bounds = array<i64: 16, 128>}]} {
    %c0 = arith.constant 0 : index
    %c0_0 = arith.constant 0 : index
    %0 = vector.load %arg1[%c0, %c0_0] : memref<16x128xf32, #tpu.memory_space<vmem>>, vector<16x128xf32>
    %c0_1 = arith.constant 0 : index
    %c0_2 = arith.constant 0 : index
    %1 = vector.load %arg2[%c0_1, %c0_2] : memref<128x128xbf16, #tpu.memory_space<vmem>>, vector<128x128xbf16>
    %c0_3 = arith.constant 0 : index
    %c0_4 = arith.constant 0 : index
    %2 = vector.load %arg3[%c0_3, %c0_4] : memref<1x128xf32, #tpu.memory_space<vmem>>, vector<1x128xf32>
    %3 = arith.truncf %0 : vector<16x128xf32> to vector<16x128xbf16>
    %cst = arith.constant dense<0.000000e+00> : vector<16x128xf32>
    %4 = tpu.matmul %3, %1, %cst {dimension_numbers = #tpu.dot_dimension_numbers<[1], [0], [0], [1], [0, 0, 1, 1], [], []>} : vector<16x128xbf16>, vector<128x128xbf16>, vector<16x128xf32> -> vector<16x128xf32>
    %5 = vector.broadcast %2 : vector<1x128xf32> to vector<16x128xf32>
    %6 = arith.addf %4, %5 : vector<16x128xf32>
    %cst_5 = arith.constant 0.000000e+00 : f32
    %7 = vector.broadcast %cst_5 : f32 to vector<16x128xf32>
    %8 = arith.maximumf %6, %7 : vector<16x128xf32>
    %c0_6 = arith.constant 0 : index
    %c0_7 = arith.constant 0 : index
    %9 = vector.load %arg4[%c0_6, %c0_7] : memref<128x128xbf16, #tpu.memory_space<vmem>>, vector<128x128xbf16>
    %c0_8 = arith.constant 0 : index
    %c0_9 = arith.constant 0 : index
    %10 = vector.load %arg5[%c0_8, %c0_9] : memref<1x128xf32, #tpu.memory_space<vmem>>, vector<1x128xf32>
    %11 = arith.truncf %8 : vector<16x128xf32> to vector<16x128xbf16>
    %cst_10 = arith.constant dense<0.000000e+00> : vector<16x128xf32>
    %12 = tpu.matmul %11, %9, %cst_10 {dimension_numbers = #tpu.dot_dimension_numbers<[1], [0], [0], [1], [0, 0, 1, 1], [], []>} : vector<16x128xbf16>, vector<128x128xbf16>, vector<16x128xf32> -> vector<16x128xf32>
    %13 = vector.broadcast %10 : vector<1x128xf32> to vector<16x128xf32>
    %14 = arith.addf %12, %13 : vector<16x128xf32>
    %cst_11 = arith.constant 0.000000e+00 : f32
    %15 = vector.broadcast %cst_11 : f32 to vector<16x128xf32>
    %16 = arith.maximumf %14, %15 : vector<16x128xf32>
    %c0_12 = arith.constant 0 : index
    %c0_13 = arith.constant 0 : index
    %17 = vector.load %arg6[%c0_12, %c0_13] : memref<128x128xbf16, #tpu.memory_space<vmem>>, vector<128x128xbf16>
    %c0_14 = arith.constant 0 : index
    %c0_15 = arith.constant 0 : index
    %18 = vector.load %arg7[%c0_14, %c0_15] : memref<1x128xf32, #tpu.memory_space<vmem>>, vector<1x128xf32>
    %19 = arith.truncf %16 : vector<16x128xf32> to vector<16x128xbf16>
    %cst_16 = arith.constant dense<0.000000e+00> : vector<16x128xf32>
    %20 = tpu.matmul %19, %17, %cst_16 {dimension_numbers = #tpu.dot_dimension_numbers<[1], [0], [0], [1], [0, 0, 1, 1], [], []>} : vector<16x128xbf16>, vector<128x128xbf16>, vector<16x128xf32> -> vector<16x128xf32>
    %21 = vector.broadcast %18 : vector<1x128xf32> to vector<16x128xf32>
    %22 = arith.addf %20, %21 : vector<16x128xf32>
    %cst_17 = arith.constant dense<0xFF800000> : vector<16xf32>
    %23 = vector.multi_reduction <maximumf>, %22, %cst_17 [1] : vector<16x128xf32> to vector<16xf32>
    %24 = vector.shape_cast %23 : vector<16xf32> to vector<16x1xf32>
    %25 = vector.broadcast %24 : vector<16x1xf32> to vector<16x128xf32>
    %26 = arith.subf %22, %25 : vector<16x128xf32>
    %27 = math.exp %26 : vector<16x128xf32>
    %cst_18 = arith.constant dense<0.000000e+00> : vector<16xf32>
    %28 = vector.multi_reduction <add>, %27, %cst_18 [1] : vector<16x128xf32> to vector<16xf32>
    %29 = vector.shape_cast %28 : vector<16xf32> to vector<16x1xf32>
    %30 = vector.broadcast %29 : vector<16x1xf32> to vector<16x128xf32>
    %31 = arith.divf %27, %30 : vector<16x128xf32>
    %c0_19 = arith.constant 0 : index
    %c0_20 = arith.constant 0 : index
    %32 = vector.load %arg8[%c0_19, %c0_20] : memref<16x128xf32, #tpu.memory_space<vmem>>, vector<16x128xf32>
    tpu.vector_store %arg8[%c0_19, %c0_20], %31 {strides = array<i32>} : memref<16x128xf32, #tpu.memory_space<vmem>>, vector<16x128xf32>,
    return
  }
  func.func @transform_0(%arg0: i32) -> (i32, i32) {
    %c0_i32 = arith.constant 0 : i32
    %c0_i32_0 = arith.constant 0 : i32
    return %arg0, %c0_i32 : i32, i32
  }
  func.func @transform_1(%arg0: i32) -> (i32, i32) {
    %c0_i32 = arith.constant 0 : i32
    %c0_i32_0 = arith.constant 0 : i32
    %c0_i32_1 = arith.constant 0 : i32
    return %c0_i32, %c0_i32_0 : i32, i32
  }
  func.func @transform_2(%arg0: i32) -> (i32, i32) {
    %c0_i32 = arith.constant 0 : i32
    %c0_i32_0 = arith.constant 0 : i32
    %c0_i32_1 = arith.constant 0 : i32
    return %c0_i32, %c0_i32_0 : i32, i32
  }
  func.func @transform_3(%arg0: i32) -> (i32, i32) {
    %c0_i32 = arith.constant 0 : i32
    %c0_i32_0 = arith.constant 0 : i32
    %c0_i32_1 = arith.constant 0 : i32
    return %c0_i32, %c0_i32_0 : i32, i32
  }
  func.func @transform_4(%arg0: i32) -> (i32, i32) {
    %c0_i32 = arith.constant 0 : i32
    %c0_i32_0 = arith.constant 0 : i32
    %c0_i32_1 = arith.constant 0 : i32
    return %c0_i32, %c0_i32_0 : i32, i32
  }
  func.func @transform_5(%arg0: i32) -> (i32, i32) {
    %c0_i32 = arith.constant 0 : i32
    %c0_i32_0 = arith.constant 0 : i32
    %c0_i32_1 = arith.constant 0 : i32
    return %c0_i32, %c0_i32_0 : i32, i32
  }
  func.func @transform_6(%arg0: i32) -> (i32, i32) {
    %c0_i32 = arith.constant 0 : i32
    %c0_i32_0 = arith.constant 0 : i32
    %c0_i32_1 = arith.constant 0 : i32
    return %c0_i32, %c0_i32_0 : i32, i32
  }
  func.func @transform_7(%arg0: i32) -> (i32, i32) {
    %c0_i32 = arith.constant 0 : i32
    %c0_i32_0 = arith.constant 0 : i32
    return %arg0, %c0_i32 : i32, i32
  }
}

</mosaic_0001>

<bundles_post_ra>
// kernel: tpu_custom_call.1
= control target key start
LH: loop header
LB: loop body
LE: loop exit
PB: predicated region body
PF: predicated region fallthrough
CT: control target
= control target key end

     0   :  { %12 = vsyncpa [#allocation3], 0  ;;  %s914_s0 = inlined_call_operand.hbm [shape: f32[16,128], index: 0, kind: input, shape index: {}]   ;;  %s915_s1 = inlined_call_operand.hbm [shape: bf16[128,128], index: 1, kind: input, shape index: {}]   ;;  %s916_s2 = inlined_call_operand.vmem [shape: f32[1,128], index: 2, kind: input, shape index: {}]   ;;  %s917_s3 = inlined_call_operand.hbm [shape: bf16[128,128], index: 3, kind: input, shape index: {}]   ;;  %s918_s4 = inlined_call_operand.vmem [shape: f32[1,128], index: 4, kind: input, shape index: {}]   ;;  %s919_s5 = inlined_call_operand.hbm [shape: bf16[128,128], index: 5, kind: input, shape index: {}]   ;;  %s920_s6 = inlined_call_operand.vmem [shape: f32[1,128], index: 6, kind: input, shape index: {}]   ;;  %s921_s7 = inlined_call_operand.hbm [shape: f32[16,128], index: 7, kind: output, shape index: {}]  }
   0x1   :  { %13 = vsyncpa [#allocation6], 0 }
   0x2   :  { %14 = vsyncpa [#allocation9], 0 }
   0x3   :  { %15 = vsyncpa [#allocation4], 0  ;;  %s742_s24 = smov [#allocation5]   ;;  %s624_s28 = scalar_lea.hbm %s915_s1, 1024 }
   0x4   :  { %s33_s25 = sshll.u32 %s742_s24, 4  ;;  %p625_p0 = scmp.ne.s32.totalorder %s915_s1, %s624_s28  ;;  %s34_s25 = int_to_ptr.vmem [resolvable:$true] %s33_s25 }
   0x5   :  { %p628_p1 = scmp.lt.u32.totalorder %s624_s28, %s915_s1 }
   0x7   :  { %p630_p2 = pnand %p628_p1, %p625_p0 }
   0x9   :  { %633 = shalt.err (!%p630_p2)
}
   0xa   :  { %s634_s10 = scalar_lea.vmem %s34_s25, 1024  ;;  %p639_p4 = scmp.lt.s32.totalorder %s34_s25, %s34_s25 }
   0xb   :  { %p635_p3 = scmp.ne.s32.totalorder %s34_s25, %s634_s10  ;;  %p640_p5 = scmp.lt.s32.totalorder %s634_s10, %s634_s10 }
   0xd   :  { %p641_p6 = por %p640_p5, %p639_p4 }
   0xf   :  { %p642_p7 = pnand %p641_p6, %p635_p3 }
  0x11   :  { %645 = shalt.err (!%p642_p7)
}
  0x12   :  { %s743_s11 = smov 64   ;;  %s744_s12 = smov 4  }
  0x13   :  { %39 = dma.hbm_to_vmem [thread:$0]  %s915_s1, 1024, %s34_s25, [#allocation6], %s743_s11, %s743_s11, %s744_s12  }
  0x14   :  { %s745_s15 = smov [#allocation2]   ;;  %s646_s19 = scalar_lea.hbm %s914_s0, 256 }
  0x15   :  { %s21_s16 = sshll.u32 %s745_s15, 4  ;;  %p647_p8 = scmp.ne.s32.totalorder %s914_s0, %s646_s19  ;;  %s22_s16 = int_to_ptr.vmem [resolvable:$true] %s21_s16 }
  0x16   :  { %p650_p9 = scmp.lt.u32.totalorder %s646_s19, %s914_s0 }
  0x18   :  { %p652_p10 = pnand %p650_p9, %p647_p8 }
  0x1a   :  { %655 = shalt.err (!%p652_p10)
}
  0x1b   :  { %s656_s24 = scalar_lea.vmem %s22_s16, 256  ;;  %p661_p12 = scmp.lt.s32.totalorder %s22_s16, %s22_s16 }
  0x1c   :  { %p657_p11 = scmp.ne.s32.totalorder %s22_s16, %s656_s24  ;;  %p662_p13 = scmp.lt.s32.totalorder %s656_s24, %s656_s24 }
  0x1e   :  { %p663_p0 = por %p662_p13, %p661_p12 }
  0x20   :  { %p664_p1 = pnand %p663_p0, %p657_p11 }
  0x22   :  { %667 = shalt.err (!%p664_p1)
}
  0x23   :  { %s746_s1 = smov 128   ;;  %s747_s25 = smov 8  }
  0x24   :  { %27 = dma.hbm_to_vmem [thread:$0]  %s914_s0, 256, %s22_s16, [#allocation3], %s746_s1, %s746_s1, %s747_s25  }
  0x25   :  { %s748_s28 = smov [#allocation7]   ;;  %s749_s30 = smov [#allocation8]  }
  0x26   :  { %s47_s29 = sshll.u32 %s748_s28, 4  ;;  %s61_s8 = sshll.u32 %s749_s30, 4  ;;  %s48_s29 = int_to_ptr.vmem [resolvable:$true] %s47_s29  ;;  %s823_s8 = int_to_ptr.vmem [resolvable:$true] %s61_s8 }
  0x27   :  { %s668_s13 = scalar_lea.hbm %s917_s3, 1024 }
  0x28   :  { %p669_p2 = scmp.ne.s32.totalorder %s917_s3, %s668_s13  ;;  %p672_p3 = scmp.lt.u32.totalorder %s668_s13, %s917_s3 }
  0x2a   :  { %p674_p4 = pnand %p672_p3, %p669_p2 }
  0x2c   :  { %677 = shalt.err (!%p674_p4)
}
  0x2d   :  { %s678_s0 = scalar_lea.vmem %s48_s29, 1024  ;;  %p683_p6 = scmp.lt.s32.totalorder %s48_s29, %s48_s29 }
  0x2e   :  { %p679_p5 = scmp.ne.s32.totalorder %s48_s29, %s678_s0  ;;  %p684_p7 = scmp.lt.s32.totalorder %s678_s0, %s678_s0 }
  0x30   :  { %p685_p8 = por %p684_p7, %p683_p6 }
  0x32   :  { %p686_p9 = pnand %p685_p8, %p679_p5 }
  0x34   :  { %689 = shalt.err (!%p686_p9)
}
  0x35   :  { %53 = dma.hbm_to_vmem [thread:$0]  %s917_s3, 1024, %s48_s29, [#allocation6], %s743_s11, %s743_s11, %s744_s12  }
  0x36   :  { %s690_s22 = scalar_lea.hbm %s919_s5, 1024 }
  0x37   :  { %p691_p10 = scmp.ne.s32.totalorder %s919_s5, %s690_s22  ;;  %p694_p11 = scmp.lt.u32.totalorder %s690_s22, %s919_s5 }
  0x39   :  { %p696_p12 = pnand %p694_p11, %p691_p10 }
  0x3b   :  { %699 = shalt.err (!%p696_p12)
}
  0x3c   :  { %s700_s28 = scalar_lea.vmem %s823_s8, 1024  ;;  %p705_p0 = scmp.lt.s32.totalorder %s823_s8, %s823_s8 }
  0x3d   :  { %p701_p13 = scmp.ne.s32.totalorder %s823_s8, %s700_s28  ;;  %p706_p1 = scmp.lt.s32.totalorder %s700_s28, %s700_s28 }
  0x3f   :  { %p707_p2 = por %p706_p1, %p705_p0 }
  0x41   :  { %p708_p3 = pnand %p707_p2, %p701_p13 }
  0x43   :  { %711 = shalt.err (!%p708_p3)
}
  0x44   :  { %67 = dma.hbm_to_vmem [thread:$0]  %s919_s5, 1024, %s823_s8, [#allocation9], %s743_s11, %s743_s11, %s744_s12  }
  0x45   :  { %734 = dma.done.wait [#allocation3], 256  }
  0x46   :  { %735 = vsyncadd [#allocation3], 4294967040 }
  0x47   :  { %736 = dma.done.wait [#allocation6], 2048  }
  0x48   :  { %737 = vsyncadd [#allocation6], 4294965248 }
  0x49   :  { %738 = dma.done.wait [#allocation9], 1024  }
  0x4a   :  { %739 = vsyncadd [#allocation9], 4294966272  ;;  %v750_v0 = vmov 0.0   ;;  %vm751_vm0 = vmmov 0   ;;  %v592_v1 = vld [vmem:[#allocation5] sm:$0xff]   ;;  %v593_v2 = vld [vmem:[#allocation5 + $0x8] sm:$0xff]  }
  0x4b   :  { %521 = vmatprep.subr.bf16.mxu0 %v750_v0  ;;  %537 = vmatprep.mubr.msk.bf16.mxu0 %vm751_vm0, %v750_v0  ;;  %v594_v3 = vld [vmem:[#allocation5 + $0x10] sm:$0xff]   ;;  %v600_v4 = vld [vmem:[#allocation7] sm:$0xff]   ;;  %v595_v5 = vld [vmem:[#allocation5 + $0x18] sm:$0xff]  }
  0x4c   :  { %541 = vmatprep.subr.bf16.mxu1 %v750_v0  ;;  %557 = vmatprep.mubr.msk.bf16.mxu1 %vm751_vm0, %v750_v0  ;;  %v601_v6 = vld [vmem:[#allocation7 + $0x8] sm:$0xff]   ;;  %v596_v7 = vld [vmem:[#allocation5 + $0x20] sm:$0xff]   ;;  %v602_v8 = vld [vmem:[#allocation7 + $0x10] sm:$0xff]  }
  0x4d   :  { %522 = vmatpush3.bf16.msra.mxu0 %v592_v1  ;;  %542 = vmatpush3.bf16.msra.mxu1 %v600_v4  ;;  %v597_v9 = vld [vmem:[#allocation5 + $0x28] sm:$0xff]   ;;  %v603_v10 = vld [vmem:[#allocation7 + $0x18] sm:$0xff]   ;;  %v598_v11 = vld [vmem:[#allocation5 + $0x30] sm:$0xff]  }
  0x4e   :  { %523 = vmatprep.subr.bf16.mxu0 %v750_v0  ;;  %543 = vmatprep.subr.bf16.mxu1 %v750_v0  ;;  %v604_v12 = vld [vmem:[#allocation7 + $0x20] sm:$0xff]   ;;  %v599_v13 = vld [vmem:[#allocation5 + $0x38] sm:$0xff]   ;;  %v83_v14 = vld [vmem:[#allocation2] sm:$0xff] }
  0x4f   :  { %v84_v15 = vld [vmem:[#allocation2 + $0x8] sm:$0xff]  ;;  %v605_v16 = vld [vmem:[#allocation7 + $0x28] sm:$0xff]   ;;  %v606_v18 = vld [vmem:[#allocation7 + $0x30] sm:$0xff]  }
  0x50   :  { %v102_v17 = vpack.c.bf16 %v84_v15, %v83_v14  ;;  %v607_v19 = vld [vmem:[#allocation7 + $0x38] sm:$0xff]   ;;  %v608_v20 = vld [vmem:[#allocation8] sm:$0xff]   ;;  %v609_v21 = vld [vmem:[#allocation8 + $0x8] sm:$0xff]  }
  0x51   :  { %524 = vmatpush3.bf16.msra.mxu0 %v593_v2  ;;  %544 = vmatpush3.bf16.msra.mxu1 %v601_v6  ;;  %v610_v22 = vld [vmem:[#allocation8 + $0x10] sm:$0xff]   ;;  %v611_v23 = vld [vmem:[#allocation8 + $0x18] sm:$0xff]   ;;  %v612_v24 = vld [vmem:[#allocation8 + $0x20] sm:$0xff]  }
  0x52   :  { %525 = vmatprep.subr.bf16.mxu0 %v750_v0  ;;  %545 = vmatprep.subr.bf16.mxu1 %v750_v0  ;;  %v613_v25 = vld [vmem:[#allocation8 + $0x28] sm:$0xff]   ;;  %v467_v26 = vld [vmem:[%s916_s2] ss:$0 sm:$0xff]  ;;  %v615_v37 = vld [vmem:[#allocation8 + $0x38] sm:$0xff]  }
  0x53   :  { %v614_v36 = vld [vmem:[#allocation8 + $0x30] sm:$0xff]  }
  0x54   :  { %v476_v38 = vld [vmem:[%s918_s4] ss:$0 sm:$0xff]  ;;  %s752_s4 = smov [#allocation10]  }
  0x55   :  { %526 = vmatpush3.bf16.msra.mxu0 %v594_v3  ;;  %546 = vmatpush3.bf16.msra.mxu1 %v602_v8  ;;  %v485_v48 = vld [vmem:[%s920_s6] ss:$0 sm:$0xff]  ;;  %s453_s6 = sshll.u32 %s752_s4, 4  ;;  %s454_s6 = int_to_ptr.vmem [resolvable:$true] %s453_s6 }
  0x56   :  { %527 = vmatprep.subr.bf16.mxu0 %v750_v0  ;;  %547 = vmatprep.subr.bf16.mxu1 %v750_v0  ;;  %s712_s9 = scalar_lea.vmem %s454_s6, 256  ;;  %p717_p5 = scmp.lt.s32.totalorder %s454_s6, %s454_s6 }
  0x57   :  { %p713_p4 = scmp.ne.s32.totalorder %s454_s6, %s712_s9  ;;  %p718_p6 = scmp.lt.s32.totalorder %s712_s9, %s712_s9 }
  0x59   :  { %528 = vmatpush3.bf16.msra.mxu0 %v595_v5  ;;  %548 = vmatpush3.bf16.msra.mxu1 %v603_v10  ;;  %p719_p7 = por %p718_p6, %p717_p5 }
  0x5a   :  { %529 = vmatprep.subr.bf16.mxu0 %v750_v0  ;;  %549 = vmatprep.subr.bf16.mxu1 %v750_v0 }
  0x5b   :  { %p720_p8 = pnand %p719_p7, %p713_p4 }
  0x5d   :  { %530 = vmatpush3.bf16.msra.mxu0 %v596_v7  ;;  %550 = vmatpush3.bf16.msra.mxu1 %v604_v12 }
  0x5e   :  { %531 = vmatprep.subr.bf16.mxu0 %v750_v0  ;;  %551 = vmatprep.subr.bf16.mxu1 %v750_v0 }
  0x61   :  { %532 = vmatpush3.bf16.msra.mxu0 %v597_v9  ;;  %552 = vmatpush3.bf16.msra.mxu1 %v605_v16 }
  0x62   :  { %533 = vmatprep.subr.bf16.mxu0 %v750_v0  ;;  %553 = vmatprep.subr.bf16.mxu1 %v750_v0 }
  0x65   :  { %534 = vmatpush3.bf16.msra.mxu0 %v598_v11  ;;  %554 = vmatpush3.bf16.msra.mxu1 %v606_v18 }
  0x66   :  { %535 = vmatprep.subr.bf16.mxu0 %v750_v0  ;;  %555 = vmatprep.subr.bf16.mxu1 %v750_v0 }
  0x69   :  { %536 = vmatpush3.bf16.msra.mxu0 %v599_v13  ;;  %556 = vmatpush3.bf16.msra.mxu1 %v607_v19 }
  0x6a   :  { %561 = vmatprep.subr.bf16.mxu0 %v750_v0 }
  0x6c   :  { %538 = vmatmul.mubr.bf16.vlgmr.msra.gmra.mrb[0].mxu0 %v102_v17 }
  0x6d   :  { %577 = vmatprep.mubr.msk.bf16.mxu0 %vm751_vm0, %v750_v0  ;;  %562 = vmatpush3.bf16.msra.mxu0 %v608_v20 }
  0x6e   :  { %563 = vmatprep.subr.bf16.mxu0 %v750_v0 }
  0x71   :  { %564 = vmatpush3.bf16.msra.mxu0 %v609_v21 }
  0x72   :  { %565 = vmatprep.subr.bf16.mxu0 %v750_v0 }
  0x75   :  { %566 = vmatpush3.bf16.msra.mxu0 %v610_v22 }
  0x76   :  { %567 = vmatprep.subr.bf16.mxu0 %v750_v0 }
  0x79   :  { %568 = vmatpush3.bf16.msra.mxu0 %v611_v23 }
  0x7a   :  { %569 = vmatprep.subr.bf16.mxu0 %v750_v0 }
  0x7d   :  { %570 = vmatpush3.bf16.msra.mxu0 %v612_v24 }
  0x7e   :  { %571 = vmatprep.subr.bf16.mxu0 %v750_v0 }
  0x81   :  { %572 = vmatpush3.bf16.msra.mxu0 %v613_v25 }
  0x82   :  { %573 = vmatprep.subr.bf16.mxu0 %v750_v0 }
  0x85   :  { %574 = vmatpush3.bf16.msra.mxu0 %v614_v36 }
  0x86   :  { %575 = vmatprep.subr.bf16.mxu0 %v750_v0 }
  0x89   :  { %576 = vmatpush3.bf16.msra.mxu0 %v615_v37 }
 0x13f   :  { %v191_v27 = vpop.f32.mrb[0].mxu0 }
 0x140   :  { %v192_v28 = vadd.f32 %v467_v26, %v191_v27  ;;  %v539_v29 = vpop.f32.mrb[1].mxu0 }
 0x141   :  { %v194_v30 = vpop.f32.mrb[2].mxu0 }
 0x142   :  { %v195_v31 = vadd.f32 %v467_v26, %v194_v30  ;;  %v540_v32 = vpop.f32.mrb[3].mxu0  ;;  %v198_v33 = vmax.f32 %v192_v28, 0.0 }
 0x144   :  { %v199_v34 = vmax.f32 %v195_v31, 0.0 }
 0x146   :  { %v217_v35 = vpack.c.bf16 %v199_v34, %v198_v33 }
 0x148   :  { %558 = vmatmul.mubr.bf16.vlgmr.msra.gmra.mrb[0].mxu1 %v217_v35 }
 0x21b   :  { %v306_v39 = vpop.f32.mrb[0].mxu1 }
 0x21c   :  { %v307_v40 = vadd.f32 %v476_v38, %v306_v39  ;;  %v559_v41 = vpop.f32.mrb[1].mxu1 }
 0x21d   :  { %v309_v42 = vpop.f32.mrb[2].mxu1 }
 0x21e   :  { %v310_v43 = vadd.f32 %v476_v38, %v309_v42  ;;  %v560_v44 = vpop.f32.mrb[3].mxu1  ;;  %v313_v45 = vmax.f32 %v307_v40, 0.0 }
 0x220   :  { %v314_v46 = vmax.f32 %v310_v43, 0.0 }
 0x222   :  { %v332_v47 = vpack.c.bf16 %v314_v46, %v313_v45 }
 0x224   :  { %578 = vmatmul.mubr.bf16.vlgmr.msra.gmra.mrb[4].mxu0 %v332_v47 }
 0x2f7   :  { %v421_v49 = vpop.f32.mrb[4].mxu0 }
 0x2f8   :  { %v422_v50 = vadd.f32 %v485_v48, %v421_v49  ;;  %v579_v51 = vpop.f32.mrb[5].mxu0 }
 0x2f9   :  { %v424_v52 = vpop.f32.mrb[6].mxu0 }
 0x2fa   :  { %428 = vmax.xlane.f32.xlu0 %v422_v50  ;;  %v580_v53 = vpop.f32.mrb[7].mxu0  ;;  %v425_v54 = vadd.f32 %v485_v48, %v424_v52 }
 0x2fe   :  { %430 = vmax.xlane.f32.xlu0 %v425_v54 }
 0x387   :  { %v429_v55 = vpop.xlane.xlu0 %428 }
 0x388   :  { %v432_v56 = vsub.f32 %v422_v50, %v429_v55 }
 0x38a   :  { %v434_v57 = vmul.f32 1.442695, %v432_v56 }
 0x38b   :  { %v431_v58 = vpop.xlane.xlu0 %430 }
 0x38c   :  { %616 = vpow2.f32 %v434_v57  ;;  %v433_v59 = vsub.f32 %v425_v54, %v431_v58 }
 0x38e   :  { %v436_v60 = vmul.f32 1.442695, %v433_v59 }
 0x390   :  { %618 = vpow2.f32 %v436_v60 }
 0x396   :  { %v617_v61 = vpop.eup %616 }
 0x397   :  { %438 = vadd.xlane.f32.xlu1 %v617_v61 }
 0x39a   :  { %v619_v62 = vpop.eup %618 }
 0x39b   :  { %440 = vadd.xlane.f32.xlu1 %v619_v62 }
 0x424   :  { %v439_v63 = vpop.xlane.xlu1 %438 }
 0x425   :  { %620 = vrcp.f32 %v439_v63 }
 0x428   :  { %v441_v0 = vpop.xlane.xlu1 %440 }
 0x429   :  { %622 = vrcp.f32 %v441_v0 }
 0x42f   :  { %v621_v1 = vpop.eup %620 }
 0x430   :  { %v443_v2 = vmul.f32 %v621_v1, %v617_v61 }
 0x432   :  { %446 = vst [vmem:[#allocation10] sm:$0xff] %v443_v2 }
 0x433   :  { %v623_v3 = vpop.eup %622 }
 0x434   :  { %v445_v4 = vmul.f32 %v623_v3, %v619_v62 }
 0x436   :  { %447 = vst [vmem:[#allocation10 + $0x8] sm:$0xff] %v445_v4 }
 0x437   :  { %723 = shalt.err (!%p720_p8)
}
 0x438   :  { %s724_s14 = scalar_lea.hbm %s921_s7, 256 }
 0x439   :  { %p725_p9 = scmp.ne.s32.totalorder %s921_s7, %s724_s14  ;;  %p728_p10 = scmp.lt.u32.totalorder %s724_s14, %s921_s7 }
 0x43b   :  { %p730_p11 = pnand %p728_p10, %p725_p9 }
 0x43d   :  { %733 = shalt.err (!%p730_p11)
}
 0x43e   :  { %459 = dma.vmem_to_hbm [thread:$0]  %s454_s6, 256, %s921_s7, [#allocation4], %s746_s1, %s746_s1, %s747_s25  }
 0x43f   :  { %740 = dma.done.wait [#allocation4], 256  }
 0x440   :  { %741 = vsyncadd [#allocation4], 4294967040 }
 0x441   :  { %463 = vsyncpa [#allocation3], 1 }
 0x442   :  { %464 = vsyncpa [#allocation6], 1 }
 0x443   :  { %465 = vsyncpa [#allocation9], 1 }
 0x444   :  { %466 = vsyncpa [#allocation4], 1 }

// kernel: tpu_custom_call.1
= control target key start
LH: loop header
LB: loop body
LE: loop exit
PB: predicated region body
PF: predicated region fallthrough
CT: control target
= control target key end

     0   :  { %12 = vsyncpa [#allocation3], 0  ;;  %s914_s0 = inlined_call_operand.hbm [shape: f32[16,128], index: 0, kind: input, shape index: {}]   ;;  %s915_s1 = inlined_call_operand.hbm [shape: bf16[128,128], index: 1, kind: input, shape index: {}]   ;;  %s916_s2 = inlined_call_operand.vmem [shape: f32[1,128], index: 2, kind: input, shape index: {}]   ;;  %s917_s3 = inlined_call_operand.hbm [shape: bf16[128,128], index: 3, kind: input, shape index: {}]   ;;  %s918_s4 = inlined_call_operand.vmem [shape: f32[1,128], index: 4, kind: input, shape index: {}]   ;;  %s919_s5 = inlined_call_operand.hbm [shape: bf16[128,128], index: 5, kind: input, shape index: {}]   ;;  %s920_s6 = inlined_call_operand.vmem [shape: f32[1,128], index: 6, kind: input, shape index: {}]   ;;  %s921_s7 = inlined_call_operand.hbm [shape: f32[16,128], index: 7, kind: output, shape index: {}]  }
   0x1   :  { %13 = vsyncpa [#allocation6], 0 }
   0x2   :  { %14 = vsyncpa [#allocation9], 0 }
   0x3   :  { %15 = vsyncpa [#allocation4], 0  ;;  %s742_s24 = smov [#allocation5]   ;;  %s624_s28 = scalar_lea.hbm %s915_s1, 1024 }
   0x4   :  { %s33_s25 = sshll.u32 %s742_s24, 4  ;;  %p625_p0 = scmp.ne.s32.totalorder %s915_s1, %s624_s28  ;;  %s34_s25 = int_to_ptr.vmem [resolvable:$true] %s33_s25 }
   0x5   :  { %p628_p1 = scmp.lt.u32.totalorder %s624_s28, %s915_s1 }
   0x7   :  { %p630_p2 = pnand %p628_p1, %p625_p0 }
   0x9   :  { %633 = shalt.err (!%p630_p2)
}
   0xa   :  { %s634_s10 = scalar_lea.vmem %s34_s25, 1024  ;;  %p639_p4 = scmp.lt.s32.totalorder %s34_s25, %s34_s25 }
   0xb   :  { %p635_p3 = scmp.ne.s32.totalorder %s34_s25, %s634_s10  ;;  %p640_p5 = scmp.lt.s32.totalorder %s634_s10, %s634_s10 }
   0xd   :  { %p641_p6 = por %p640_p5, %p639_p4 }
   0xf   :  { %p642_p7 = pnand %p641_p6, %p635_p3 }
  0x11   :  { %645 = shalt.err (!%p642_p7)
}
  0x12   :  { %s743_s11 = smov 64   ;;  %s744_s12 = smov 4  }
  0x13   :  { %39 = dma.hbm_to_vmem [thread:$0]  %s915_s1, 1024, %s34_s25, [#allocation6], %s743_s11, %s743_s11, %s744_s12  }
  0x14   :  { %s745_s15 = smov [#allocation2]   ;;  %s646_s19 = scalar_lea.hbm %s914_s0, 256 }
  0x15   :  { %s21_s16 = sshll.u32 %s745_s15, 4  ;;  %p647_p8 = scmp.ne.s32.totalorder %s914_s0, %s646_s19  ;;  %s22_s16 = int_to_ptr.vmem [resolvable:$true] %s21_s16 }
  0x16   :  { %p650_p9 = scmp.lt.u32.totalorder %s646_s19, %s914_s0 }
  0x18   :  { %p652_p10 = pnand %p650_p9, %p647_p8 }
  0x1a   :  { %655 = shalt.err (!%p652_p10)
}
  0x1b   :  { %s656_s24 = scalar_lea.vmem %s22_s16, 256  ;;  %p661_p12 = scmp.lt.s32.totalorder %s22_s16, %s22_s16 }
  0x1c   :  { %p657_p11 = scmp.ne.s32.totalorder %s22_s16, %s656_s24  ;;  %p662_p13 = scmp.lt.s32.totalorder %s656_s24, %s656_s24 }
  0x1e   :  { %p663_p0 = por %p662_p13, %p661_p12 }
  0x20   :  { %p664_p1 = pnand %p663_p0, %p657_p11 }
  0x22   :  { %667 = shalt.err (!%p664_p1)
}
  0x23   :  { %s746_s1 = smov 128   ;;  %s747_s25 = smov 8  }
  0x24   :  { %27 = dma.hbm_to_vmem [thread:$0]  %s914_s0, 256, %s22_s16, [#allocation3], %s746_s1, %s746_s1, %s747_s25  }
  0x25   :  { %s748_s28 = smov [#allocation7]   ;;  %s749_s30 = smov [#allocation8]  }
  0x26   :  { %s47_s29 = sshll.u32 %s748_s28, 4  ;;  %s61_s8 = sshll.u32 %s749_s30, 4  ;;  %s48_s29 = int_to_ptr.vmem [resolvable:$true] %s47_s29  ;;  %s823_s8 = int_to_ptr.vmem [resolvable:$true] %s61_s8 }
  0x27   :  { %s668_s13 = scalar_lea.hbm %s917_s3, 1024 }
  0x28   :  { %p669_p2 = scmp.ne.s32.totalorder %s917_s3, %s668_s13  ;;  %p672_p3 = scmp.lt.u32.totalorder %s668_s13, %s917_s3 }
  0x2a   :  { %p674_p4 = pnand %p672_p3, %p669_p2 }
  0x2c   :  { %677 = shalt.err (!%p674_p4)
}
  0x2d   :  { %s678_s0 = scalar_lea.vmem %s48_s29, 1024  ;;  %p683_p6 = scmp.lt.s32.totalorder %s48_s29, %s48_s29 }
  0x2e   :  { %p679_p5 = scmp.ne.s32.totalorder %s48_s29, %s678_s0  ;;  %p684_p7 = scmp.lt.s32.totalorder %s678_s0, %s678_s0 }
  0x30   :  { %p685_p8 = por %p684_p7, %p683_p6 }
  0x32   :  { %p686_p9 = pnand %p685_p8, %p679_p5 }
  0x34   :  { %689 = shalt.err (!%p686_p9)
}
  0x35   :  { %53 = dma.hbm_to_vmem [thread:$0]  %s917_s3, 1024, %s48_s29, [#allocation6], %s743_s11, %s743_s11, %s744_s12  }
  0x36   :  { %s690_s22 = scalar_lea.hbm %s919_s5, 1024 }
  0x37   :  { %p691_p10 = scmp.ne.s32.totalorder %s919_s5, %s690_s22  ;;  %p694_p11 = scmp.lt.u32.totalorder %s690_s22, %s919_s5 }
  0x39   :  { %p696_p12 = pnand %p694_p11, %p691_p10 }
  0x3b   :  { %699 = shalt.err (!%p696_p12)
}
  0x3c   :  { %s700_s28 = scalar_lea.vmem %s823_s8, 1024  ;;  %p705_p0 = scmp.lt.s32.totalorder %s823_s8, %s823_s8 }
  0x3d   :  { %p701_p13 = scmp.ne.s32.totalorder %s823_s8, %s700_s28  ;;  %p706_p1 = scmp.lt.s32.totalorder %s700_s28, %s700_s28 }
  0x3f   :  { %p707_p2 = por %p706_p1, %p705_p0 }
  0x41   :  { %p708_p3 = pnand %p707_p2, %p701_p13 }
  0x43   :  { %711 = shalt.err (!%p708_p3)
}
  0x44   :  { %67 = dma.hbm_to_vmem [thread:$0]  %s919_s5, 1024, %s823_s8, [#allocation9], %s743_s11, %s743_s11, %s744_s12  }
  0x45   :  { %734 = dma.done.wait [#allocation3], 256  }
  0x46   :  { %735 = vsyncadd [#allocation3], 4294967040 }
  0x47   :  { %736 = dma.done.wait [#allocation6], 2048  }
  0x48   :  { %737 = vsyncadd [#allocation6], 4294965248 }
  0x49   :  { %738 = dma.done.wait [#allocation9], 1024  }
  0x4a   :  { %739 = vsyncadd [#allocation9], 4294966272  ;;  %v750_v0 = vmov 0.0   ;;  %vm751_vm0 = vmmov 0   ;;  %v592_v1 = vld [vmem:[#allocation5] sm:$0xff]   ;;  %v593_v2 = vld [vmem:[#allocation5 + $0x8] sm:$0xff]  }
  0x4b   :  { %521 = vmatprep.subr.bf16.mxu0 %v750_v0  ;;  %537 = vmatprep.mubr.msk.bf16.mxu0 %vm751_vm0, %v750_v0  ;;  %v594_v3 = vld [vmem:[#allocation5 + $0x10] sm:$0xff]   ;;  %v600_v4 = vld [vmem:[#allocation7] sm:$0xff]   ;;  %v595_v5 = vld [vmem:[#allocation5 + $0x18] sm:$0xff]  }
  0x4c   :  { %541 = vmatprep.subr.bf16.mxu1 %v750_v0  ;;  %557 = vmatprep.mubr.msk.bf16.mxu1 %vm751_vm0, %v750_v0  ;;  %v601_v6 = vld [vmem:[#allocation7 + $0x8] sm:$0xff]   ;;  %v596_v7 = vld [vmem:[#allocation5 + $0x20] sm:$0xff]   ;;  %v602_v8 = vld [vmem:[#allocation7 + $0x10] sm:$0xff]  }
  0x4d   :  { %522 = vmatpush3.bf16.msra.mxu0 %v592_v1  ;;  %542 = vmatpush3.bf16.msra.mxu1 %v600_v4  ;;  %v597_v9 = vld [vmem:[#allocation5 + $0x28] sm:$0xff]   ;;  %v603_v10 = vld [vmem:[#allocation7 + $0x18] sm:$0xff]   ;;  %v598_v11 = vld [vmem:[#allocation5 + $0x30] sm:$0xff]  }
  0x4e   :  { %523 = vmatprep.subr.bf16.mxu0 %v750_v0  ;;  %543 = vmatprep.subr.bf16.mxu1 %v750_v0  ;;  %v604_v12 = vld [vmem:[#allocation7 + $0x20] sm:$0xff]   ;;  %v599_v13 = vld [vmem:[#allocation5 + $0x38] sm:$0xff]   ;;  %v83_v14 = vld [vmem:[#allocation2] sm:$0xff] }
  0x4f   :  { %v84_v15 = vld [vmem:[#allocation2 + $0x8] sm:$0xff]  ;;  %v605_v16 = vld [vmem:[#allocation7 + $0x28] sm:$0xff]   ;;  %v606_v18 = vld [vmem:[#allocation7 + $0x30] sm:$0xff]  }
  0x50   :  { %v102_v17 = vpack.c.bf16 %v84_v15, %v83_v14  ;;  %v607_v19 = vld [vmem:[#allocation7 + $0x38] sm:$0xff]   ;;  %v608_v20 = vld [vmem:[#allocation8] sm:$0xff]   ;;  %v609_v21 = vld [vmem:[#allocation8 + $0x8] sm:$0xff]  }
  0x51   :  { %524 = vmatpush3.bf16.msra.mxu0 %v593_v2  ;;  %544 = vmatpush3.bf16.msra.mxu1 %v601_v6  ;;  %v610_v22 = vld [vmem:[#allocation8 + $0x10] sm:$0xff]   ;;  %v611_v23 = vld [vmem:[#allocation8 + $0x18] sm:$0xff]   ;;  %v612_v24 = vld [vmem:[#allocation8 + $0x20] sm:$0xff]  }
  0x52   :  { %525 = vmatprep.subr.bf16.mxu0 %v750_v0  ;;  %545 = vmatprep.subr.bf16.mxu1 %v750_v0  ;;  %v613_v25 = vld [vmem:[#allocation8 + $0x28] sm:$0xff]   ;;  %v467_v26 = vld [vmem:[%s916_s2] ss:$0 sm:$0xff]  ;;  %v615_v37 = vld [vmem:[#allocation8 + $0x38] sm:$0xff]  }
  0x53   :  { %v614_v36 = vld [vmem:[#allocation8 + $0x30] sm:$0xff]  }
  0x54   :  { %v476_v38 = vld [vmem:[%s918_s4] ss:$0 sm:$0xff]  ;;  %s752_s4 = smov [#allocation10]  }
  0x55   :  { %526 = vmatpush3.bf16.msra.mxu0 %v594_v3  ;;  %546 = vmatpush3.bf16.msra.mxu1 %v602_v8  ;;  %v485_v48 = vld [vmem:[%s920_s6] ss:$0 sm:$0xff]  ;;  %s453_s6 = sshll.u32 %s752_s4, 4  ;;  %s454_s6 = int_to_ptr.vmem [resolvable:$true] %s453_s6 }
  0x56   :  { %527 = vmatprep.subr.bf16.mxu0 %v750_v0  ;;  %547 = vmatprep.subr.bf16.mxu1 %v750_v0  ;;  %s712_s9 = scalar_lea.vmem %s454_s6, 256  ;;  %p717_p5 = scmp.lt.s32.totalorder %s454_s6, %s454_s6 }
  0x57   :  { %p713_p4 = scmp.ne.s32.totalorder %s454_s6, %s712_s9  ;;  %p718_p6 = scmp.lt.s32.totalorder %s712_s9, %s712_s9 }
  0x59   :  { %528 = vmatpush3.bf16.msra.mxu0 %v595_v5  ;;  %548 = vmatpush3.bf16.msra.mxu1 %v603_v10  ;;  %p719_p7 = por %p718_p6, %p717_p5 }
  0x5a   :  { %529 = vmatprep.subr.bf16.mxu0 %v750_v0  ;;  %549 = vmatprep.subr.bf16.mxu1 %v750_v0 }
  0x5b   :  { %p720_p8 = pnand %p719_p7, %p713_p4 }
  0x5d   :  { %530 = vmatpush3.bf16.msra.mxu0 %v596_v7  ;;  %550 = vmatpush3.bf16.msra.mxu1 %v604_v12 }
  0x5e   :  { %531 = vmatprep.subr.bf16.mxu0 %v750_v0  ;;  %551 = vmatprep.subr.bf16.mxu1 %v750_v0 }
  0x61   :  { %532 = vmatpush3.bf16.msra.mxu0 %v597_v9  ;;  %552 = vmatpush3.bf16.msra.mxu1 %v605_v16 }
  0x62   :  { %533 = vmatprep.subr.bf16.mxu0 %v750_v0  ;;  %553 = vmatprep.subr.bf16.mxu1 %v750_v0 }
  0x65   :  { %534 = vmatpush3.bf16.msra.mxu0 %v598_v11  ;;  %554 = vmatpush3.bf16.msra.mxu1 %v606_v18 }
  0x66   :  { %535 = vmatprep.subr.bf16.mxu0 %v750_v0  ;;  %555 = vmatprep.subr.bf16.mxu1 %v750_v0 }
  0x69   :  { %536 = vmatpush3.bf16.msra.mxu0 %v599_v13  ;;  %556 = vmatpush3.bf16.msra.mxu1 %v607_v19 }
  0x6a   :  { %561 = vmatprep.subr.bf16.mxu0 %v750_v0 }
  0x6c   :  { %538 = vmatmul.mubr.bf16.vlgmr.msra.gmra.mrb[0].mxu0 %v102_v17 }
  0x6d   :  { %577 = vmatprep.mubr.msk.bf16.mxu0 %vm751_vm0, %v750_v0  ;;  %562 = vmatpush3.bf16.msra.mxu0 %v608_v20 }
  0x6e   :  { %563 = vmatprep.subr.bf16.mxu0 %v750_v0 }
  0x71   :  { %564 = vmatpush3.bf16.msra.mxu0 %v609_v21 }
  0x72   :  { %565 = vmatprep.subr.bf16.mxu0 %v750_v0 }
  0x75   :  { %566 = vmatpush3.bf16.msra.mxu0 %v610_v22 }
  0x76   :  { %567 = vmatprep.subr.bf16.mxu0 %v750_v0 }
  0x79   :  { %568 = vmatpush3.bf16.msra.mxu0 %v611_v23 }
  0x7a   :  { %569 = vmatprep.subr.bf16.mxu0 %v750_v0 }
  0x7d   :  { %570 = vmatpush3.bf16.msra.mxu0 %v612_v24 }
  0x7e   :  { %571 = vmatprep.subr.bf16.mxu0 %v750_v0 }
  0x81   :  { %572 = vmatpush3.bf16.msra.mxu0 %v613_v25 }
  0x82   :  { %573 = vmatprep.subr.bf16.mxu0 %v750_v0 }
  0x85   :  { %574 = vmatpush3.bf16.msra.mxu0 %v614_v36 }
  0x86   :  { %575 = vmatprep.subr.bf16.mxu0 %v750_v0 }
  0x89   :  { %576 = vmatpush3.bf16.msra.mxu0 %v615_v37 }
 0x13f   :  { %v191_v27 = vpop.f32.mrb[0].mxu0 }
 0x140   :  { %v192_v28 = vadd.f32 %v467_v26, %v191_v27  ;;  %v539_v29 = vpop.f32.mrb[1].mxu0 }
 0x141   :  { %v194_v30 = vpop.f32.mrb[2].mxu0 }
 0x142   :  { %v195_v31 = vadd.f32 %v467_v26, %v194_v30  ;;  %v540_v32 = vpop.f32.mrb[3].mxu0  ;;  %v198_v33 = vmax.f32 %v192_v28, 0.0 }
 0x144   :  { %v199_v34 = vmax.f32 %v195_v31, 0.0 }
 0x146   :  { %v217_v35 = vpack.c.bf16 %v199_v34, %v198_v33 }
 0x148   :  { %558 = vmatmul.mubr.bf16.vlgmr.msra.gmra.mrb[0].mxu1 %v217_v35 }
 0x21b   :  { %v306_v39 = vpop.f32.mrb[0].mxu1 }
 0x21c   :  { %v307_v40 = vadd.f32 %v476_v38, %v306_v39  ;;  %v559_v41 = vpop.f32.mrb[1].mxu1 }
 0x21d   :  { %v309_v42 = vpop.f32.mrb[2].mxu1 }
 0x21e   :  { %v310_v43 = vadd.f32 %v476_v38, %v309_v42  ;;  %v560_v44 = vpop.f32.mrb[3].mxu1  ;;  %v313_v45 = vmax.f32 %v307_v40, 0.0 }
 0x220   :  { %v314_v46 = vmax.f32 %v310_v43, 0.0 }
 0x222   :  { %v332_v47 = vpack.c.bf16 %v314_v46, %v313_v45 }
 0x224   :  { %578 = vmatmul.mubr.bf16.vlgmr.msra.gmra.mrb[4].mxu0 %v332_v47 }
 0x2f7   :  { %v421_v49 = vpop.f32.mrb[4].mxu0 }
 0x2f8   :  { %v422_v50 = vadd.f32 %v485_v48, %v421_v49  ;;  %v579_v51 = vpop.f32.mrb[5].mxu0 }
 0x2f9   :  { %v424_v52 = vpop.f32.mrb[6].mxu0 }
 0x2fa   :  { %428 = vmax.xlane.f32.xlu0 %v422_v50  ;;  %v580_v53 = vpop.f32.mrb[7].mxu0  ;;  %v425_v54 = vadd.f32 %v485_v48, %v424_v52 }
 0x2fe   :  { %430 = vmax.xlane.f32.xlu0 %v425_v54 }
 0x387   :  { %v429_v55 = vpop.xlane.xlu0 %428 }
 0x388   :  { %v432_v56 = vsub.f32 %v422_v50, %v429_v55 }
 0x38a   :  { %v434_v57 = vmul.f32 1.442695, %v432_v56 }
 0x38b   :  { %v431_v58 = vpop.xlane.xlu0 %430 }
 0x38c   :  { %616 = vpow2.f32 %v434_v57  ;;  %v433_v59 = vsub.f32 %v425_v54, %v431_v58 }
 0x38e   :  { %v436_v60 = vmul.f32 1.442695, %v433_v59 }
 0x390   :  { %618 = vpow2.f32 %v436_v60 }
 0x396   :  { %v617_v61 = vpop.eup %616 }
 0x397   :  { %438 = vadd.xlane.f32.xlu1 %v617_v61 }
 0x39a   :  { %v619_v62 = vpop.eup %618 }
 0x39b   :  { %440 = vadd.xlane.f32.xlu1 %v619_v62 }
 0x424   :  { %v439_v63 = vpop.xlane.xlu1 %438 }
 0x425   :  { %620 = vrcp.f32 %v439_v63 }
 0x428   :  { %v441_v0 = vpop.xlane.xlu1 %440 }
 0x429   :  { %622 = vrcp.f32 %v441_v0 }
 0x42f   :  { %v621_v1 = vpop.eup %620 }
 0x430   :  { %v443_v2 = vmul.f32 %v621_v1, %v617_v61 }
 0x432   :  { %446 = vst [vmem:[#allocation10] sm:$0xff] %v443_v2 }
 0x433   :  { %v623_v3 = vpop.eup %622 }
 0x434   :  { %v445_v4 = vmul.f32 %v623_v3, %v619_v62 }
 0x436   :  { %447 = vst [vmem:[#allocation10 + $0x8] sm:$0xff] %v445_v4 }
 0x437   :  { %723 = shalt.err (!%p720_p8)
}
 0x438   :  { %s724_s14 = scalar_lea.hbm %s921_s7, 256 }
 0x439   :  { %p725_p9 = scmp.ne.s32.totalorder %s921_s7, %s724_s14  ;;  %p728_p10 = scmp.lt.u32.totalorder %s724_s14, %s921_s7 }
 0x43b   :  { %p730_p11 = pnand %p728_p10, %p725_p9 }
 0x43d   :  { %733 = shalt.err (!%p730_p11)
}
 0x43e   :  { %459 = dma.vmem_to_hbm [thread:$0]  %s454_s6, 256, %s921_s7, [#allocation4], %s746_s1, %s746_s1, %s747_s25  }
 0x43f   :  { %740 = dma.done.wait [#allocation4], 256  }
 0x440   :  { %741 = vsyncadd [#allocation4], 4294967040 }
 0x441   :  { %463 = vsyncpa [#allocation3], 1 }
 0x442   :  { %464 = vsyncpa [#allocation6], 1 }
 0x443   :  { %465 = vsyncpa [#allocation9], 1 }
 0x444   :  { %466 = vsyncpa [#allocation4], 1 }

</bundles_post_ra>
